<compile_context>
chip_gen: v6e
topology: v6e:2x2x1
jax: 0.10.0
libtpu: 0.0.40
codegen_flags: <defaults>
</compile_context>

<pallas_src>
import jax
import jax.numpy as jnp
from jax.experimental import pallas as pl
from jax.experimental.pallas import tpu as pltpu

IN_DIM = 13
H1 = 50
H2 = 250
OUT_DIM = 4

H1_PAD = 128   # 50  -> 128 (full lane tile)
H2_PAD = 256   # 250 -> 256 (full lane tile)


def mlp_kernel(x_ref, w1_ref, b1_ref, w2_ref, b2_ref, w3_ref, b3_ref, o_ref):
    # Layer 1: (tb, 13) @ (13, 128) + bias, relu.  Padded h1 columns are 0.
    x = x_ref[...].astype(w1_ref.dtype)
    h1 = jnp.dot(x, w1_ref[...], preferred_element_type=jnp.float32)
    h1 = jnp.maximum(h1 + b1_ref[...], 0.0)
    # Layer 2: (tb, 128) @ (128, 256) + bias; sigmoid in one-EUP tanh form.
    h2 = jnp.dot(h1.astype(w2_ref.dtype), w2_ref[...],
                 preferred_element_type=jnp.float32)
    h2 = 0.5 * (jnp.tanh(0.5 * (h2 + b2_ref[...])) + 1.0)
    # Output layer: (tb, 256) @ (256, 4) + bias.  Padded h2 columns multiply
    # zero rows of w3 -> no effect.  Store only the 4 real columns.
    out = jnp.dot(h2.astype(w3_ref.dtype), w3_ref[...],
                  preferred_element_type=jnp.float32)
    o_ref[...] = (out + b3_ref[...]).astype(o_ref.dtype)


def _pad2(a, rows, cols):
    return jnp.pad(a, ((0, rows - a.shape[0]), (0, cols - a.shape[1])))


def prepare_params(params, *, matmul_dtype=jnp.bfloat16):
    """Pad & cast the six raw parameters ONCE (hoisted out of the forward).

    Weights are cast to `matmul_dtype` (bf16 -> native MXU on all TPU gens);
    biases stay f32 and are added to the f32 accumulators inside the kernel.
    """
    w1, b1, w2, b2, w3, b3 = params
    return (
        _pad2(w1, IN_DIM, H1_PAD).astype(matmul_dtype),
        _pad2(b1, 1, H1_PAD).astype(jnp.float32),
        _pad2(w2, H1_PAD, H2_PAD).astype(matmul_dtype),
        _pad2(b2, 1, H2_PAD).astype(jnp.float32),
        _pad2(w3, H2_PAD, OUT_DIM).astype(matmul_dtype),
        b3.astype(jnp.float32),
    )


def _round_up(v, m):
    return ((v + m - 1) // m) * m


def mlp_forward(x, prepared_params, *, block_b=2048):
    """x: [B, 13] float32 -> [B, 4] float32.  Params from prepare_params()."""
    w1p, b1p, w2p, b2p, w3p, b3p = prepared_params
    B = x.shape[0]

    # Batch tile: multiple of 8 (sublane); at least 2 grid blocks whenever B
    # allows (so the "parallel" axis shards across both v7x TensorCores);
    # capped at block_b so double-buffered x/out + h1/h2 temporaries stay well
    # inside scoped VMEM on every generation (v7x: 64 MiB physical).
    tb = max(8, _round_up(pl.cdiv(B, 2), 8))
    tb = min(tb, _round_up(block_b, 8))
    n_blocks = pl.cdiv(B, tb)
    b_pad = n_blocks * tb
    xp = jnp.pad(x, ((0, b_pad - B), (0, 0))) if b_pad != B else x

    # Weights/biases: constant index_map -> resident in VMEM across the grid.
    const = lambda a: pl.BlockSpec(a.shape, lambda i: (0, 0))

    param_bytes = sum(int(a.size) * a.dtype.itemsize
                      for a in (w1p, b1p, w2p, b2p, w3p, b3p))
    cost = pl.CostEstimate(
        flops=2 * b_pad * (IN_DIM * H1_PAD + H1_PAD * H2_PAD + H2_PAD * OUT_DIM),
        transcendentals=b_pad * H2_PAD,
        bytes_accessed=b_pad * IN_DIM * 4 + b_pad * OUT_DIM * 4 + param_bytes,
    )

    out = pl.pallas_call(
        mlp_kernel,
        out_shape=jax.ShapeDtypeStruct((b_pad, OUT_DIM), jnp.float32),
        grid=(n_blocks,),
        in_specs=[
            pl.BlockSpec((tb, IN_DIM), lambda i: (i, 0)),   # x: batch-blocked
            const(w1p), const(b1p),
            const(w2p), const(b2p),
            const(w3p), const(b3p),
        ],
        out_specs=pl.BlockSpec((tb, OUT_DIM), lambda i: (i, 0)),
        compiler_params=pltpu.CompilerParams(
            dimension_semantics=("parallel",)),
        cost_estimate=cost,
    )(xp, w1p, b1p, w2p, b2p, w3p, b3p)

    return out[:B] if b_pad != B else out


def init_params(key, first_layer_size=50, second_layer_size=250):
    """Deterministic init mimicking torch.nn.Linear's U(-1/sqrt(in), 1/sqrt(in))."""
    dims = [(IN_DIM, first_layer_size),
            (first_layer_size, second_layer_size),
            (second_layer_size, OUT_DIM)]
    params = []
    for (fan_in, fan_out) in dims:
        key, kw, kb = jax.random.split(key, 3)
        bound = 1.0 / jnp.sqrt(fan_in)
        w = jax.random.uniform(kw, (fan_in, fan_out), jnp.float32, -bound, bound)
        b = jax.random.uniform(kb, (1, fan_out), jnp.float32, -bound, bound)
        params += [w, b]
    return params


def reference_forward(x, params):
    w1, b1, w2, b2, w3, b3 = params
    h1 = jnp.maximum(x @ w1 + b1, 0.0)
    h2 = jax.nn.sigmoid(h1 @ w2 + b2)
    return h2 @ w3 + b3


if __name__ == "__main__":
    key = jax.random.PRNGKey(0)
    kx, kx2, kp = jax.random.split(key, 3)

    params = init_params(kp)
    params_f32 = prepare_params(params, matmul_dtype=jnp.float32)
    params_bf16 = prepare_params(params, matmul_dtype=jnp.bfloat16)

    # Single-block, exact f32 path (tight tolerance).
    B = 8
    x = jax.random.normal(kx, (B, IN_DIM), dtype=jnp.float32)
    ref = reference_forward(x, params)
    out_f32 = jax.block_until_ready(mlp_forward(x, params_f32))
    assert out_f32.shape == (B, OUT_DIM), out_f32.shape
    assert jnp.allclose(out_f32, ref, atol=1e-4, rtol=1e-4), \
        float(jnp.max(jnp.abs(out_f32 - ref)))

    # Multi-block (2 grid steps): exercises batch tiling + padding.
    B2 = 64
    x2 = jax.random.normal(kx2, (B2, IN_DIM), dtype=jnp.float32)
    ref2 = reference_forward(x2, params)

    out2_f32 = jax.block_until_ready(mlp_forward(x2, params_f32))
    assert out2_f32.shape == (B2, OUT_DIM), out2_f32.shape
    assert jnp.allclose(out2_f32, ref2, atol=1e-4, rtol=1e-4), \
        float(jnp.max(jnp.abs(out2_f32 - ref2)))

    # bf16-MXU path (f32 accumulation): looser tolerance, bf16 operands.
    out2_bf16 = jax.block_until_ready(mlp_forward(x2, params_bf16))
    assert out2_bf16.shape == (B2, OUT_DIM), out2_bf16.shape
    assert jnp.allclose(out2_bf16, ref2, atol=1e-1, rtol=1e-1), \
        float(jnp.max(jnp.abs(out2_bf16 - ref2)))

    print("KERNEL_OK")
</pallas_src>

<mosaic_0001>
module attributes {stable_mosaic.version = 11 : i64} {
  func.func @mlp_kernel(%arg0: i32, %arg1: memref<8x13xf32, #tpu.memory_space<vmem>>, %arg2: memref<13x128xf32, #tpu.memory_space<vmem>>, %arg3: memref<1x128xf32, #tpu.memory_space<vmem>>, %arg4: memref<128x256xf32, #tpu.memory_space<vmem>>, %arg5: memref<1x256xf32, #tpu.memory_space<vmem>>, %arg6: memref<256x4xf32, #tpu.memory_space<vmem>>, %arg7: memref<1x4xf32, #tpu.memory_space<vmem>>, %arg8: memref<8x4xf32, #tpu.memory_space<vmem>>) attributes {dimension_semantics = [#tpu.dimension_semantics<parallel>], iteration_bounds = array<i64: 1>, scalar_prefetch = 0 : i64, scratch_operands = 0 : i64, tpu.core_type = #tpu.core_type<tc>, window_params = [{transform_indices = @transform_0, window_bounds = array<i64: 8, 13>}, {pipeline_mode = #tpu.pipeline_mode<synchronous>, transform_indices = @transform_1, window_bounds = array<i64: 13, 128>}, {pipeline_mode = #tpu.pipeline_mode<synchronous>, transform_indices = @transform_2, window_bounds = array<i64: 1, 128>}, {pipeline_mode = #tpu.pipeline_mode<synchronous>, transform_indices = @transform_3, window_bounds = array<i64: 128, 256>}, {pipeline_mode = #tpu.pipeline_mode<synchronous>, transform_indices = @transform_4, window_bounds = array<i64: 1, 256>}, {pipeline_mode = #tpu.pipeline_mode<synchronous>, transform_indices = @transform_5, window_bounds = array<i64: 256, 4>}, {pipeline_mode = #tpu.pipeline_mode<synchronous>, transform_indices = @transform_6, window_bounds = array<i64: 1, 4>}, {transform_indices = @transform_7, window_bounds = array<i64: 8, 4>}]} {
    %c0 = arith.constant 0 : index
    %c0_0 = arith.constant 0 : index
    %0 = vector.load %arg1[%c0, %c0_0] : memref<8x13xf32, #tpu.memory_space<vmem>>, vector<8x13xf32>
    %c0_1 = arith.constant 0 : index
    %c0_2 = arith.constant 0 : index
    %1 = vector.load %arg2[%c0_1, %c0_2] : memref<13x128xf32, #tpu.memory_space<vmem>>, vector<13x128xf32>
    %cst = arith.constant dense<0.000000e+00> : vector<8x128xf32>
    %2 = tpu.matmul %0, %1, %cst {dimension_numbers = #tpu.dot_dimension_numbers<[1], [0], [0], [1], [0, 0, 1, 1], [], []>} : vector<8x13xf32>, vector<13x128xf32>, vector<8x128xf32> -> vector<8x128xf32>
    %c0_3 = arith.constant 0 : index
    %c0_4 = arith.constant 0 : index
    %3 = vector.load %arg3[%c0_3, %c0_4] : memref<1x128xf32, #tpu.memory_space<vmem>>, vector<1x128xf32>
    %4 = vector.broadcast %3 : vector<1x128xf32> to vector<8x128xf32>
    %5 = arith.addf %2, %4 : vector<8x128xf32>
    %cst_5 = arith.constant 0.000000e+00 : f32
    %6 = vector.broadcast %cst_5 : f32 to vector<8x128xf32>
    %7 = arith.maximumf %5, %6 : vector<8x128xf32>
    %c0_6 = arith.constant 0 : index
    %c0_7 = arith.constant 0 : index
    %8 = vector.load %arg4[%c0_6, %c0_7] : memref<128x256xf32, #tpu.memory_space<vmem>>, vector<128x256xf32>
    %cst_8 = arith.constant dense<0.000000e+00> : vector<8x256xf32>
    %9 = tpu.matmul %7, %8, %cst_8 {dimension_numbers = #tpu.dot_dimension_numbers<[1], [0], [0], [1], [0, 0, 1, 1], [], []>} : vector<8x128xf32>, vector<128x256xf32>, vector<8x256xf32> -> vector<8x256xf32>
    %c0_9 = arith.constant 0 : index
    %c0_10 = arith.constant 0 : index
    %10 = vector.load %arg5[%c0_9, %c0_10] : memref<1x256xf32, #tpu.memory_space<vmem>>, vector<1x256xf32>
    %11 = vector.broadcast %10 : vector<1x256xf32> to vector<8x256xf32>
    %12 = arith.addf %9, %11 : vector<8x256xf32>
    %cst_11 = arith.constant 5.000000e-01 : f32
    %13 = vector.broadcast %cst_11 : f32 to vector<8x256xf32>
    %14 = arith.mulf %13, %12 : vector<8x256xf32>
    %15 = math.tanh %14 : vector<8x256xf32>
    %cst_12 = arith.constant 1.000000e+00 : f32
    %16 = vector.broadcast %cst_12 : f32 to vector<8x256xf32>
    %17 = arith.addf %15, %16 : vector<8x256xf32>
    %cst_13 = arith.constant 5.000000e-01 : f32
    %18 = vector.broadcast %cst_13 : f32 to vector<8x256xf32>
    %19 = arith.mulf %18, %17 : vector<8x256xf32>
    %c0_14 = arith.constant 0 : index
    %c0_15 = arith.constant 0 : index
    %20 = vector.load %arg6[%c0_14, %c0_15] : memref<256x4xf32, #tpu.memory_space<vmem>>, vector<256x4xf32>
    %cst_16 = arith.constant dense<0.000000e+00> : vector<8x4xf32>
    %21 = tpu.matmul %19, %20, %cst_16 {dimension_numbers = #tpu.dot_dimension_numbers<[1], [0], [0], [1], [0, 0, 1, 1], [], []>} : vector<8x256xf32>, vector<256x4xf32>, vector<8x4xf32> -> vector<8x4xf32>
    %c0_17 = arith.constant 0 : index
    %c0_18 = arith.constant 0 : index
    %22 = vector.load %arg7[%c0_17, %c0_18] : memref<1x4xf32, #tpu.memory_space<vmem>>, vector<1x4xf32>
    %23 = vector.broadcast %22 : vector<1x4xf32> to vector<8x4xf32>
    %24 = arith.addf %21, %23 : vector<8x4xf32>
    %c0_19 = arith.constant 0 : index
    %c0_20 = arith.constant 0 : index
    %25 = vector.load %arg8[%c0_19, %c0_20] : memref<8x4xf32, #tpu.memory_space<vmem>>, vector<8x4xf32>
    tpu.vector_store %arg8[%c0_19, %c0_20], %24 {strides = array<i32>} : memref<8x4xf32, #tpu.memory_space<vmem>>, vector<8x4xf32>,
    return
  }
  func.func @transform_0(%arg0: i32) -> (i32, i32) {
    %c0_i32 = arith.constant 0 : i32
    %c0_i32_0 = arith.constant 0 : i32
    return %arg0, %c0_i32 : i32, i32
  }
  func.func @transform_1(%arg0: i32) -> (i32, i32) {
    %c0_i32 = arith.constant 0 : i32
    %c0_i32_0 = arith.constant 0 : i32
    %c0_i32_1 = arith.constant 0 : i32
    return %c0_i32, %c0_i32_0 : i32, i32
  }
  func.func @transform_2(%arg0: i32) -> (i32, i32) {
    %c0_i32 = arith.constant 0 : i32
    %c0_i32_0 = arith.constant 0 : i32
    %c0_i32_1 = arith.constant 0 : i32
    return %c0_i32, %c0_i32_0 : i32, i32
  }
  func.func @transform_3(%arg0: i32) -> (i32, i32) {
    %c0_i32 = arith.constant 0 : i32
    %c0_i32_0 = arith.constant 0 : i32
    %c0_i32_1 = arith.constant 0 : i32
    return %c0_i32, %c0_i32_0 : i32, i32
  }
  func.func @transform_4(%arg0: i32) -> (i32, i32) {
    %c0_i32 = arith.constant 0 : i32
    %c0_i32_0 = arith.constant 0 : i32
    %c0_i32_1 = arith.constant 0 : i32
    return %c0_i32, %c0_i32_0 : i32, i32
  }
  func.func @transform_5(%arg0: i32) -> (i32, i32) {
    %c0_i32 = arith.constant 0 : i32
    %c0_i32_0 = arith.constant 0 : i32
    %c0_i32_1 = arith.constant 0 : i32
    return %c0_i32, %c0_i32_0 : i32, i32
  }
  func.func @transform_6(%arg0: i32) -> (i32, i32) {
    %c0_i32 = arith.constant 0 : i32
    %c0_i32_0 = arith.constant 0 : i32
    %c0_i32_1 = arith.constant 0 : i32
    return %c0_i32, %c0_i32_0 : i32, i32
  }
  func.func @transform_7(%arg0: i32) -> (i32, i32) {
    %c0_i32 = arith.constant 0 : i32
    %c0_i32_0 = arith.constant 0 : i32
    return %arg0, %c0_i32 : i32, i32
  }
}

</mosaic_0001>

<bundles_post_ra>
// kernel: tpu_custom_call.1
= control target key start
LH: loop header
LB: loop body
LE: loop exit
PB: predicated region body
PF: predicated region fallthrough
CT: control target
= control target key end

     0   :  { %12 = vsyncpa [#allocation3], 0  ;;  %s740_s0 = inlined_call_operand.vmem [shape: f32[8,13], index: 0, kind: input, shape index: {}]   ;;  %s741_s1 = inlined_call_operand.hbm [shape: f32[13,128], index: 1, kind: input, shape index: {}]   ;;  %s742_s2 = inlined_call_operand.vmem [shape: f32[1,128], index: 2, kind: input, shape index: {}]   ;;  %s743_s3 = inlined_call_operand.vmem [shape: f32[128,256], index: 3, kind: input, shape index: {}]   ;;  %s744_s4 = inlined_call_operand.hbm [shape: f32[1,256], index: 4, kind: input, shape index: {}]   ;;  %s745_s5 = inlined_call_operand.vmem [shape: f32[256,4], index: 5, kind: input, shape index: {}]   ;;  %s746_s6 = inlined_call_operand.vmem [shape: f32[1,4], index: 6, kind: input, shape index: {}]   ;;  %s747_s7 = inlined_call_operand.vmem [shape: f32[8,4], index: 7, kind: output, shape index: {}]  }
   0x1   :  { %13 = vsyncpa [#allocation5], 0  ;;  %s484_s24 = smov [#allocation2]  }
   0x2   :  { %s21_s25 = sshll.u32 %s484_s24, 4  ;;  %s22_s25 = int_to_ptr.vmem [resolvable:$true] %s21_s25 }
   0x3   :  { %s448_s26 = scalar_lea.vmem %s22_s25, 256  ;;  %p453_p1 = scmp.lt.s32.totalorder %s22_s25, %s22_s25 }
   0x4   :  { %p449_p0 = scmp.ne.s32.totalorder %s22_s25, %s448_s26  ;;  %p454_p2 = scmp.lt.s32.totalorder %s448_s26, %s448_s26 }
   0x6   :  { %p455_p3 = por %p454_p2, %p453_p1 }
   0x8   :  { %p456_p4 = pnand %p455_p3, %p449_p0 }
   0xa   :  { %459 = shalt.err (!%p456_p4)
}
   0xb   :  { %s485_s27 = smov 128   ;;  %s486_s28 = smov 8  }
   0xc   :  { %27 = dma.hbm_to_vmem [thread:$0]  %s741_s1, 256, %s22_s25, [#allocation3], %s485_s27, %s485_s27, %s486_s28  }
   0xd   :  { %s487_s8 = smov [#allocation4]  }
   0xe   :  { %s38_s9 = sshll.u32 %s487_s8, 4  ;;  %s39_s9 = int_to_ptr.vmem [resolvable:$true] %s38_s9 }
   0xf   :  { %s468_s10 = scalar_lea.vmem %s39_s9, 32  ;;  %p473_p6 = scmp.lt.s32.totalorder %s39_s9, %s39_s9 }
  0x10   :  { %p469_p5 = scmp.ne.s32.totalorder %s39_s9, %s468_s10  ;;  %p474_p7 = scmp.lt.s32.totalorder %s468_s10, %s468_s10 }
  0x12   :  { %p475_p8 = por %p474_p7, %p473_p6 }
  0x14   :  { %p476_p9 = pnand %p475_p8, %p469_p5 }
  0x16   :  { %479 = shalt.err (!%p476_p9)
}
  0x17   :  { %41 = dma.hbm_to_vmem [thread:$0]  %s744_s4, 32, %s39_s9, [#allocation5]  }
  0x18   :  { %480 = dma.done.wait [#allocation3], 256  }
  0x19   :  { %481 = vsyncadd [#allocation3], 4294967040 }
  0x1a   :  { %482 = dma.done.wait [#allocation5], 32  }
  0x1b   :  { %483 = vsyncadd [#allocation5], 4294967264  ;;  %v488_v0 = vmov 0.0   ;;  %vm489_vm0 = vmmov 0   ;;  %vm66_vm1 = vcmask 1044480   ;;  %v53_v2 = vld [vmem:[#allocation2] sm:$0xff] }
  0x1c   :  { %423 = vmatprep.subr.mxu0 %v488_v0  ;;  %427 = vmatprep.mubr.msk.f32.mxu0 %vm489_vm0, %v488_v0  ;;  %v54_v1 = vld [vmem:[#allocation2 + $0x8] sm:$0x1f]  ;;  %v52_v3 = vld [vmem:[%s740_s0] sm:$0xff]  ;;  %vm62_vm2 = vcmask 105472   ;;  %v172_v4 = vld [vmem:[%s743_s3 + $0xf8] sm:$0xff]  ;;  %vm373_vm3 = vcmask 31744  }
  0x1d   :  { %249 = vmatprep.mubr.f32.mxu1 %v488_v0  ;;  %424 = vmatpush3.msk.msra.mxu0 %vm66_vm1, %v54_v1  ;;  %v171_v5 = vld [vmem:[%s743_s3 + $0xf0] sm:$0xff]  ;;  %v170_v6 = vld [vmem:[%s743_s3 + $0xe8] sm:$0xff]  ;;  %v169_v7 = vld [vmem:[%s743_s3 + $0xe0] sm:$0xff] }
  0x1e   :  { %425 = vmatprep.subr.mxu0 %v488_v0  ;;  %185 = vmatprep.subr.mxu1 %v172_v4  ;;  %v168_v8 = vld [vmem:[%s743_s3 + $0xd8] sm:$0xff]  ;;  %v167_v9 = vld [vmem:[%s743_s3 + $0xd0] sm:$0xff]  ;;  %v166_v10 = vld [vmem:[%s743_s3 + $0xc8] sm:$0xff] }
  0x1f   :  { %426 = vmatpush3.msra.mxu0 %v53_v2  ;;  %186 = vmatpush1.msra.mxu1 %v171_v5  ;;  %v165_v11 = vld [vmem:[%s743_s3 + $0xc0] sm:$0xff]  ;;  %v164_v12 = vld [vmem:[%s743_s3 + $0xb8] sm:$0xff]  ;;  %v163_v13 = vld [vmem:[%s743_s3 + $0xb0] sm:$0xff] }
  0x20   :  { %428 = vmatmul.mubr.msk.f32.vlgmr.msra.gmra.mxu0 %vm62_vm2, %v52_v3  ;;  %187 = vmatprep.subr.mxu1 %v170_v6  ;;  %v162_v14 = vld [vmem:[%s743_s3 + $0xa8] sm:$0xff]  ;;  %v161_v15 = vld [vmem:[%s743_s3 + $0xa0] sm:$0xff]  ;;  %v160_v16 = vld [vmem:[%s743_s3 + $0x98] sm:$0xff] }
  0x21   :  { %188 = vmatpush1.msra.mxu1 %v169_v7  ;;  %v159_v17 = vld [vmem:[%s743_s3 + $0x90] sm:$0xff]  ;;  %v158_v18 = vld [vmem:[%s743_s3 + $0x88] sm:$0xff]  ;;  %v157_v19 = vld [vmem:[%s743_s3 + $0x80] sm:$0xff] }
  0x22   :  { %189 = vmatprep.subr.mxu1 %v168_v8  ;;  %v156_v20 = vld [vmem:[%s743_s3 + $0x78] sm:$0xff]  ;;  %v155_v21 = vld [vmem:[%s743_s3 + $0x70] sm:$0xff]  ;;  %v154_v22 = vld [vmem:[%s743_s3 + $0x68] sm:$0xff] }
  0x23   :  { %190 = vmatpush1.msra.mxu1 %v167_v9  ;;  %v153_v23 = vld [vmem:[%s743_s3 + $0x60] sm:$0xff]  ;;  %v152_v24 = vld [vmem:[%s743_s3 + $0x58] sm:$0xff]  ;;  %v151_v25 = vld [vmem:[%s743_s3 + $0x50] sm:$0xff]  ;;  %v175_v9 = vlaneseq }
  0x24   :  { %191 = vmatprep.subr.mxu1 %v166_v10  ;;  %v150_v26 = vld [vmem:[%s743_s3 + $0x48] sm:$0xff]  ;;  %v149_v27 = vld [vmem:[%s743_s3 + $0x40] sm:$0xff]  ;;  %v148_v28 = vld [vmem:[%s743_s3 + $0x38] sm:$0xff] }
  0x25   :  { %192 = vmatpush1.msra.mxu1 %v165_v11  ;;  %v147_v29 = vld [vmem:[%s743_s3 + $0x30] sm:$0xff]  ;;  %v146_v30 = vld [vmem:[%s743_s3 + $0x28] sm:$0xff]  ;;  %v145_v31 = vld [vmem:[%s743_s3 + $0x20] sm:$0xff]  ;;  %v176_v10 = vshrl.u32 %v175_v9, 7 }
  0x26   :  { %193 = vmatprep.subr.mxu1 %v164_v12  ;;  %v144_v32 = vld [vmem:[%s743_s3 + $0x18] sm:$0xff]  ;;  %v143_v33 = vld [vmem:[%s743_s3 + $0x10] sm:$0xff]  ;;  %v142_v34 = vld [vmem:[%s743_s3 + $0x8] sm:$0xff] }
  0x27   :  { %194 = vmatpush1.msra.mxu1 %v163_v13  ;;  %v141_v35 = vld [vmem:[%s743_s3] sm:$0xff]  ;;  %v295_v36 = vld [vmem:[%s745_s5 + $0xf8] sm:$0xff]  ;;  %v294_v38 = vld [vmem:[%s745_s5 + $0xf0] sm:$0xff]  ;;  %v177_v11 = vsub.s32 0, %v176_v10  ;;  %v181_v13 = vsub.s32 1, %v176_v10 }
  0x28   :  { %195 = vmatprep.subr.mxu1 %v162_v14  ;;  %v279_v37 = vld [vmem:[%s745_s5 + $0x78] sm:$0xff]  ;;  %388 = vmatprep.subr.mxu0 %v295_v36  ;;  %v278_v39 = vld [vmem:[%s745_s5 + $0x70] sm:$0xff]  ;;  %v293_v40 = vld [vmem:[%s745_s5 + $0xe8] sm:$0xff] }
  0x29   :  { %196 = vmatpush1.msra.mxu1 %v161_v15  ;;  %389 = vmatpush3.msra.mxu0 %v279_v37  ;;  %v277_v41 = vld [vmem:[%s745_s5 + $0x68] sm:$0xff]  ;;  %v381_v42 = vld [vmem:[%s742_s2] ss:$0 sm:$0xff]  ;;  %v291_v49 = vld [vmem:[%s745_s5 + $0xd8] sm:$0xff] }
  0x2a   :  { %197 = vmatprep.subr.mxu1 %v160_v16  ;;  %390 = vmatprep.subr.mxu0 %v294_v38  ;;  %v292_v47 = vld [vmem:[%s745_s5 + $0xe0] sm:$0xff]  ;;  %v275_v50 = vld [vmem:[%s745_s5 + $0x58] sm:$0xff]  ;;  %v290_v51 = vld [vmem:[%s745_s5 + $0xd0] sm:$0xff] }
  0x2b   :  { %198 = vmatpush1.msra.mxu1 %v159_v17  ;;  %391 = vmatpush3.msra.mxu0 %v278_v39  ;;  %v276_v48 = vld [vmem:[%s745_s5 + $0x60] sm:$0xff]  ;;  %v274_v52 = vld [vmem:[%s745_s5 + $0x50] sm:$0xff]  ;;  %v289_v53 = vld [vmem:[%s745_s5 + $0xc8] sm:$0xff] }
  0x2c   :  { %199 = vmatprep.subr.mxu1 %v158_v18  ;;  %392 = vmatprep.subr.mxu0 %v293_v40  ;;  %v273_v54 = vld [vmem:[%s745_s5 + $0x48] sm:$0xff]  ;;  %v288_v55 = vld [vmem:[%s745_s5 + $0xc0] sm:$0xff]  ;;  %v287_v57 = vld [vmem:[%s745_s5 + $0xb8] sm:$0xff] }
  0x2d   :  { %200 = vmatpush1.msra.mxu1 %v157_v19  ;;  %393 = vmatpush3.msra.mxu0 %v277_v41  ;;  %v272_v56 = vld [vmem:[%s745_s5 + $0x40] sm:$0xff]  ;;  %v271_v58 = vld [vmem:[%s745_s5 + $0x38] sm:$0xff]  ;;  %v286_v59 = vld [vmem:[%s745_s5 + $0xb0] sm:$0xff] }
  0x2e   :  { %201 = vmatprep.subr.mxu1 %v156_v20  ;;  %394 = vmatprep.subr.mxu0 %v292_v47  ;;  %v270_v60 = vld [vmem:[%s745_s5 + $0x30] sm:$0xff]  ;;  %v285_v61 = vld [vmem:[%s745_s5 + $0xa8] sm:$0xff]  ;;  %v284_v63 = vld [vmem:[%s745_s5 + $0xa0] sm:$0xff] }
  0x2f   :  { %202 = vmatpush1.msra.mxu1 %v155_v21  ;;  %395 = vmatpush3.msra.mxu0 %v276_v48  ;;  %v269_v62 = vld [vmem:[%s745_s5 + $0x28] sm:$0xff]  ;;  %v268_v0 = vld [vmem:[%s745_s5 + $0x20] sm:$0xff]  ;;  %v283_v1 = vld [vmem:[%s745_s5 + $0x98] sm:$0xff] }
  0x30   :  { %203 = vmatprep.subr.mxu1 %v154_v22  ;;  %396 = vmatprep.subr.mxu0 %v291_v49  ;;  %v267_v2 = vld [vmem:[%s745_s5 + $0x18] sm:$0xff]  ;;  %v282_v3 = vld [vmem:[%s745_s5 + $0x90] sm:$0xff]  ;;  %v281_v5 = vld [vmem:[%s745_s5 + $0x88] sm:$0xff] }
  0x31   :  { %204 = vmatpush1.msra.mxu1 %v153_v23  ;;  %397 = vmatpush3.msra.mxu0 %v275_v50  ;;  %v266_v4 = vld [vmem:[%s745_s5 + $0x10] sm:$0xff]  ;;  %v265_v6 = vld [vmem:[%s745_s5 + $0x8] sm:$0xff]  ;;  %v280_v7 = vld [vmem:[%s745_s5 + $0x80] sm:$0xff] }
  0x32   :  { %205 = vmatprep.subr.mxu1 %v152_v24  ;;  %398 = vmatprep.subr.mxu0 %v290_v51  ;;  %v264_v8 = vld [vmem:[%s745_s5] sm:$0xff]  ;;  %v173_v12 = vld [vmem:[#allocation4] sm:$0x3] }
  0x33   :  { %206 = vmatpush1.msra.mxu1 %v151_v25  ;;  %399 = vmatpush3.msra.mxu0 %v274_v52  ;;  %v178_v14 = vrot.slane %v173_v12, %v177_v11  ;;  %v182_v15 = vrot.slane %v173_v12, %v181_v13 }
  0x34   :  { %207 = vmatprep.subr.mxu1 %v150_v26  ;;  %400 = vmatprep.subr.mxu0 %v289_v53 }
  0x35   :  { %208 = vmatpush1.msra.mxu1 %v149_v27  ;;  %401 = vmatpush3.msra.mxu0 %v273_v54 }
  0x36   :  { %209 = vmatprep.subr.mxu1 %v148_v28  ;;  %402 = vmatprep.subr.mxu0 %v288_v55 }
  0x37   :  { %210 = vmatpush1.msra.mxu1 %v147_v29  ;;  %403 = vmatpush3.msra.mxu0 %v272_v56  ;;  %v384_v29 = vld [vmem:[%s746_s6] ss:$0 sm:$0xff] }
  0x38   :  { %211 = vmatprep.subr.mxu1 %v146_v30  ;;  %404 = vmatprep.subr.mxu0 %v287_v57 }
  0x39   :  { %212 = vmatpush1.msra.mxu1 %v145_v31  ;;  %405 = vmatpush3.msra.mxu0 %v271_v58 }
  0x3a   :  { %213 = vmatprep.subr.mxu1 %v144_v32  ;;  %406 = vmatprep.subr.mxu0 %v286_v59 }
  0x3b   :  { %214 = vmatpush1.msra.mxu1 %v143_v33  ;;  %407 = vmatpush3.msra.mxu0 %v270_v60 }
  0x3c   :  { %215 = vmatprep.subr.mxu1 %v142_v34  ;;  %408 = vmatprep.subr.mxu0 %v285_v61 }
  0x3d   :  { %216 = vmatpush1.msra.mxu1 %v141_v35  ;;  %409 = vmatpush3.msra.mxu0 %v269_v62 }
  0x3e   :  { %410 = vmatprep.subr.mxu0 %v284_v63 }
  0x3f   :  { %411 = vmatpush3.msra.mxu0 %v268_v0 }
  0x40   :  { %412 = vmatprep.subr.mxu0 %v283_v1 }
  0x41   :  { %413 = vmatpush3.msra.mxu0 %v267_v2 }
  0x42   :  { %414 = vmatprep.subr.mxu0 %v282_v3 }
  0x43   :  { %415 = vmatpush3.msra.mxu0 %v266_v4 }
  0x44   :  { %416 = vmatprep.subr.mxu0 %v281_v5 }
  0x45   :  { %417 = vmatpush3.msra.mxu0 %v265_v6 }
  0x46   :  { %418 = vmatprep.subr.mxu0 %v280_v7 }
  0x47   :  { %419 = vmatpush3.msra.mxu0 %v264_v8 }
  0xe0   :  { %v136_v43 = vpop.f32.mrf.mxu0 }
  0xe1   :  { %v137_v44 = vadd.f32 %v381_v42, %v136_v43 }
  0xe2   :  { %v429_v45 = vpop.f32.mrf.mxu0 }
  0xe3   :  { %v140_v46 = vmax.f32 %v137_v44, 0.0 }
  0xe5   :  { %250 = vmatmul.mubr.f32.vlgmr.msra.gmra.mxu1 %v140_v46 }
 0x1a5   :  { %v251_v16 = vpop.f32.mrf.mxu1 }
 0x1a6   :  { %v252_v17 = vadd.f32 %v251_v16, %v178_v14 }
 0x1a7   :  { %v253_v18 = vpop.f32.mrf.mxu1 }
 0x1a8   :  { %v256_v19 = vmul.f32 0.5, %v252_v17  ;;  %v254_v20 = vadd.f32 %v253_v18, %v182_v15 }
 0x1aa   :  { %436 = vtanh.f32 %v256_v19  ;;  %v257_v21 = vmul.f32 0.5, %v254_v20 }
 0x1ac   :  { %438 = vtanh.f32 %v257_v21 }
 0x1b7   :  { %v437_v22 = vpop.eup %436 }
 0x1b8   :  { %v260_v24 = vadd.f32 1.0, %v437_v22 }
 0x1b9   :  { %v439_v23 = vpop.eup %438 }
 0x1ba   :  { %v261_v25 = vadd.f32 1.0, %v439_v23  ;;  %v262_v27 = vmul.f32 0.5, %v260_v24 }
 0x1bc   :  { %v263_v26 = vmul.f32 0.5, %v261_v25 }
 0x1be   :  { %367 = vmatprep.mubr.f32.mxu0 %v263_v26 }
 0x1bf   :  { %368 = vmatmul.mubr.f32.vlgmr.msra.gmra.mxu0 %v262_v27 }
 0x27f   :  { %v420_v28 = vpop.f32.mrf.mxu0 }
 0x281   :  { %v421_v30 = vpop.f32.mrf.mxu0 }
 0x282   :  { %v422_v31 = vadd.f32 %v421_v30, %v420_v28 }
 0x284   :  { %v370_v32 = vadd.f32 %v422_v31, %v384_v29 }
 0x286   :  { %374 = vst.msk [vmem:[%s747_s7] sm:$0xff] %vm373_vm3, %v370_v32 }
 0x287   :  { %379 = vsyncpa [#allocation3], 1 }
 0x288   :  { %380 = vsyncpa [#allocation5], 1 }

</bundles_post_ra>
